<compile_context>
chip_gen: v5e
topology: v5e:2x2
jax: 0.10.0
libtpu: 0.0.40
codegen_flags: <defaults>
</compile_context>

<pallas_src>
import functools

import jax
import jax.numpy as jnp
from jax import lax
from jax.experimental import pallas as pl
from jax.experimental.pallas import tpu as pltpu

LN_EPS = 1e-5  # PyTorch nn.LayerNorm default


def _round_up(x, m):
    return ((x + m - 1) // m) * m


def _ln_linear(agg, w_ref, b_ref, out_ref):
    """LayerNorm (affine pre-folded into W/b) followed by Linear on the MXU."""
    mu = jnp.mean(agg, axis=-1, keepdims=True)
    var = jnp.mean((agg - mu) * (agg - mu), axis=-1, keepdims=True)
    xn = (agg - mu) * lax.rsqrt(var + LN_EPS)
    out_ref[...] = (
        jnp.dot(xn, w_ref[...], preferred_element_type=jnp.float32) + b_ref[...]
    )


def _agg_decoder_kernel(x_ref, w_ref, b_ref, out_ref, *, agg_mode, n_valid):
    # x_ref: [TB, T_blk, D]; w_ref: [D, out_pad]; b_ref: [1, out_pad]
    tb, t_blk, d = x_ref.shape
    # Keep LN/VPU math in f32 (v5e has no bf16 VPU/EUP).
    x = x_ref[...].astype(jnp.float32)

    if t_blk > n_valid:  # cls row was DMA'd -> mask it in-register (no relayout).
        tok = lax.broadcasted_iota(jnp.int32, (tb, t_blk, d), 1)
        keep = tok < n_valid

    if agg_mode == 'mean_tokens':          # PyTorch: torch.max over tokens
        if t_blk > n_valid:
            x = jnp.where(keep, x, -jnp.inf)
        agg = jnp.max(x, axis=1)
    elif agg_mode == 'max_tokens':         # PyTorch: torch.mean over tokens
        if t_blk > n_valid:
            x = jnp.where(keep, x, 0.0)
        agg = jnp.sum(x, axis=1) * (1.0 / n_valid)
    else:
        raise NotImplementedError(agg_mode)

    _ln_linear(agg, w_ref, b_ref, out_ref)


def _cls_decoder_kernel(x_ref, w_ref, b_ref, out_ref):
    # x_ref: [TB, D] (cls token only, sliced in the wrapper)
    _ln_linear(x_ref[...].astype(jnp.float32), w_ref, b_ref, out_ref)


def patch_transformer_decoder(patch_output, params, *, task_mode, decoder_agg_mode,
                              n_out_channels, patch_size,
                              vmem_budget_bytes=24 << 20):
    """patch_output: [B, n_tokens+1, token_dim] float32."""
    B, T, D = patch_output.shape
    gamma, beta, w, b = params
    out_dim = w.shape[1]

    # --- Fold LayerNorm affine into the Linear (constant precompute) ---------
    w_f = (gamma[:, None] * w).astype(jnp.float32)     # [D, out_dim]
    b_f = (beta @ w + b).astype(jnp.float32)           # [out_dim]

    # --- Lane-dense output: pad out_dim up to a full 128-lane multiple -------
    out_pad = _round_up(max(out_dim, 128), 128)
    if out_pad != out_dim:
        w_f = jnp.pad(w_f, ((0, 0), (0, out_pad - out_dim)))
        b_f = jnp.pad(b_f, (0, out_pad - out_dim))
    b_f = b_f.reshape(1, out_pad)

    # --- Per-mode input layout ------------------------------------------------
    if decoder_agg_mode == 'cls_token':
        # Only the cls row is needed; slice in the wrapper so the kernel moves
        # B*D values instead of B*T*D.
        x_in = patch_output[:, -1, :]                  # [B, D]
        t_eff = 1
        kernel = _cls_decoder_kernel
    elif decoder_agg_mode in ('mean_tokens', 'max_tokens'):
        x_in = patch_output
        n_valid = T - 1
        # Exclude the cls row at the BlockSpec when T-1 keeps the sublane dim
        # 8-aligned; otherwise DMA all T tokens and mask in-kernel.
        t_eff = n_valid if (n_valid % 8 == 0) else T
        kernel = functools.partial(_agg_decoder_kernel,
                                   agg_mode=decoder_agg_mode, n_valid=n_valid)
    else:
        raise NotImplementedError(
            f'Decoder input mode "{decoder_agg_mode}" not implemented.')

    # --- Batch tile sized from an explicit VMEM budget (v7x-safe) -------------
    bytes_per_elt = 4
    fixed = (D * out_pad + out_pad) * bytes_per_elt            # resident W + b
    per_row = 2 * (t_eff * D + out_pad) * bytes_per_elt        # dbl-buffered x + out
    tb = max(1, int((vmem_budget_bytes - fixed) // per_row))
    if tb >= B:
        tb = B                                                 # single tile, full B
    else:
        tb = max(8, (tb // 8) * 8)                             # sublane-aligned tiles
        tb = min(tb, 1024)
    grid = (pl.cdiv(B, tb),)

    if decoder_agg_mode == 'cls_token':
        in_specs = [
            pl.BlockSpec((tb, D), lambda i: (i, 0)),
            pl.BlockSpec((D, out_pad), lambda i: (0, 0)),
            pl.BlockSpec((1, out_pad), lambda i: (0, 0)),
        ]
    else:
        in_specs = [
            pl.BlockSpec((tb, t_eff, D), lambda i: (i, 0, 0)),
            pl.BlockSpec((D, out_pad), lambda i: (0, 0)),
            pl.BlockSpec((1, out_pad), lambda i: (0, 0)),
        ]

    pred = pl.pallas_call(
        kernel,
        out_shape=jax.ShapeDtypeStruct((B, out_pad), jnp.float32),
        grid_spec=pl.GridSpec(
            grid=grid,
            in_specs=in_specs,
            out_specs=pl.BlockSpec((tb, out_pad), lambda i: (i, 0)),
        ),
        compiler_params=pltpu.CompilerParams(
            dimension_semantics=("parallel",),        # shard batch tiles over TCs
            vmem_limit_bytes=32 * 1024 * 1024,
        ),
    )(x_in, w_f, b_f)

    pred = pred[:, :out_dim]                          # drop lane padding

    if task_mode in ['total_bin_change', 'total_sem_change']:
        pred = jnp.reshape(pred, (-1, n_out_channels, patch_size, patch_size))
    elif task_mode in ['ss_splice_change', 'ss_splice_change_index', 'ss_arrow_of_time']:
        pass
    else:
        raise NotImplementedError(
            f'Task mode "{task_mode}" not implemented for Patch Transformer Decoder.')
    return pred


def init_params(key, token_dim, out_dim):
    """Deterministic synthetic init: LayerNorm(gamma=1, beta=0), Linear(W, b)."""
    k_w, k_b = jax.random.split(key)
    gamma = jnp.ones((token_dim,), jnp.float32)
    beta = jnp.zeros((token_dim,), jnp.float32)
    # PyTorch Linear: y = x @ W.T + b with W of shape (out, in); we store (in, out).
    bound = 1.0 / (token_dim ** 0.5)
    w = jax.random.uniform(k_w, (token_dim, out_dim), jnp.float32, -bound, bound)
    b = jax.random.uniform(k_b, (out_dim,), jnp.float32, -bound, bound)
    return gamma, beta, w, b


def _reference(patch_output, params, *, decoder_agg_mode, task_mode,
               n_out_channels, patch_size):
    """Pure-JAX reference mirroring the PyTorch module (unfused LN affine)."""
    gamma, beta, w, b = params
    if decoder_agg_mode == 'mean_tokens':
        agg = jnp.max(patch_output[:, :-1, :], axis=1)
    elif decoder_agg_mode == 'max_tokens':
        agg = jnp.mean(patch_output[:, :-1, :], axis=1)
    elif decoder_agg_mode == 'cls_token':
        agg = patch_output[:, -1, :]
    else:
        raise NotImplementedError(decoder_agg_mode)
    mu = jnp.mean(agg, axis=-1, keepdims=True)
    var = jnp.mean((agg - mu) ** 2, axis=-1, keepdims=True)
    y = ((agg - mu) / jnp.sqrt(var + LN_EPS)) * gamma + beta
    pred = y @ w + b
    if task_mode in ['total_bin_change', 'total_sem_change']:
        pred = pred.reshape(-1, n_out_channels, patch_size, patch_size)
    return pred


if __name__ == "__main__":
    # Small config consistent with the module:
    #   task_mode='total_bin_change', feat_size[-1]=token_dim=32,
    #   patch_size=4, n_out_channels=2  => out_dim = 4*4*2 = 32
    B, token_dim = 2, 32
    patch_size, n_out_channels = 4, 2
    task_mode = 'total_bin_change'
    out_dim = patch_size ** 2 * n_out_channels

    key = jax.random.PRNGKey(0)
    k_x, k_x2, k_p = jax.random.split(key, 3)
    params = init_params(k_p, token_dim, out_dim)

    # n_tokens=8 -> T-1 = 8 (cls dropped at the BlockSpec, no in-kernel mask)
    # n_tokens=10 -> T-1 = 10 (full-T DMA, in-kernel cls masking path)
    configs = [
        ('mean_tokens', 8, k_x),
        ('max_tokens', 8, k_x),
        ('cls_token', 8, k_x),
        ('mean_tokens', 10, k_x2),
        ('max_tokens', 10, k_x2),
    ]

    for agg_mode, n_tokens, kx in configs:
        x = jax.random.normal(kx, (B, n_tokens + 1, token_dim), jnp.float32)
        pred = patch_transformer_decoder(
            x, params,
            task_mode=task_mode,
            decoder_agg_mode=agg_mode,
            n_out_channels=n_out_channels,
            patch_size=patch_size,
        )
        pred = jax.block_until_ready(pred)
        assert pred.shape == (B, n_out_channels, patch_size, patch_size), pred.shape

        ref = _reference(x, params, decoder_agg_mode=agg_mode, task_mode=task_mode,
                         n_out_channels=n_out_channels, patch_size=patch_size)
        assert jnp.allclose(pred, ref, atol=1e-4, rtol=1e-4), (
            agg_mode, n_tokens, float(jnp.max(jnp.abs(pred - ref))))

    print("KERNEL_OK")
</pallas_src>

<mosaic_0001>
module attributes {stable_mosaic.version = 11 : i64} {
  func.func @_agg_decoder_kernel(%arg0: i32, %arg1: memref<2x8x32xf32, #tpu.memory_space<vmem>>, %arg2: memref<32x128xf32, #tpu.memory_space<vmem>>, %arg3: memref<1x128xf32, #tpu.memory_space<vmem>>, %arg4: memref<2x128xf32, #tpu.memory_space<vmem>>) attributes {dimension_semantics = [#tpu.dimension_semantics<parallel>], iteration_bounds = array<i64: 1>, scalar_prefetch = 0 : i64, scratch_operands = 0 : i64, tpu.core_type = #tpu.core_type<tc>, window_params = [{transform_indices = @transform_0, window_bounds = array<i64: 2, 8, 32>}, {pipeline_mode = #tpu.pipeline_mode<synchronous>, transform_indices = @transform_1, window_bounds = array<i64: 32, 128>}, {pipeline_mode = #tpu.pipeline_mode<synchronous>, transform_indices = @transform_2, window_bounds = array<i64: 1, 128>}, {transform_indices = @transform_3, window_bounds = array<i64: 2, 128>}]} {
    %c0 = arith.constant 0 : index
    %c0_0 = arith.constant 0 : index
    %c0_1 = arith.constant 0 : index
    %0 = vector.load %arg1[%c0, %c0_0, %c0_1] : memref<2x8x32xf32, #tpu.memory_space<vmem>>, vector<2x8x32xf32>
    %cst = arith.constant dense<0xFF800000> : vector<2x32xf32>
    %1 = vector.multi_reduction <maximumf>, %0, %cst [1] : vector<2x8x32xf32> to vector<2x32xf32>
    %cst_2 = arith.constant dense<0.000000e+00> : vector<2xf32>
    %2 = vector.multi_reduction <add>, %1, %cst_2 [1] : vector<2x32xf32> to vector<2xf32>
    %3 = vector.shape_cast %2 : vector<2xf32> to vector<2x1xf32>
    %cst_3 = arith.constant 3.200000e+01 : f32
    %4 = vector.broadcast %cst_3 : f32 to vector<2x1xf32>
    %5 = arith.divf %3, %4 : vector<2x1xf32>
    %6 = vector.broadcast %5 : vector<2x1xf32> to vector<2x32xf32>
    %7 = arith.subf %1, %6 : vector<2x32xf32>
    %8 = vector.broadcast %5 : vector<2x1xf32> to vector<2x32xf32>
    %9 = arith.subf %1, %8 : vector<2x32xf32>
    %10 = arith.mulf %7, %9 : vector<2x32xf32>
    %cst_4 = arith.constant dense<0.000000e+00> : vector<2xf32>
    %11 = vector.multi_reduction <add>, %10, %cst_4 [1] : vector<2x32xf32> to vector<2xf32>
    %12 = vector.shape_cast %11 : vector<2xf32> to vector<2x1xf32>
    %cst_5 = arith.constant 3.200000e+01 : f32
    %13 = vector.broadcast %cst_5 : f32 to vector<2x1xf32>
    %14 = arith.divf %12, %13 : vector<2x1xf32>
    %15 = vector.broadcast %5 : vector<2x1xf32> to vector<2x32xf32>
    %16 = arith.subf %1, %15 : vector<2x32xf32>
    %cst_6 = arith.constant 9.99999974E-6 : f32
    %17 = vector.broadcast %cst_6 : f32 to vector<2x1xf32>
    %18 = arith.addf %14, %17 : vector<2x1xf32>
    %19 = math.rsqrt %18 : vector<2x1xf32>
    %20 = vector.broadcast %19 : vector<2x1xf32> to vector<2x32xf32>
    %21 = arith.mulf %16, %20 : vector<2x32xf32>
    %c0_7 = arith.constant 0 : index
    %c0_8 = arith.constant 0 : index
    %22 = vector.load %arg2[%c0_7, %c0_8] : memref<32x128xf32, #tpu.memory_space<vmem>>, vector<32x128xf32>
    %cst_9 = arith.constant dense<0.000000e+00> : vector<2x128xf32>
    %23 = tpu.matmul %21, %22, %cst_9 {dimension_numbers = #tpu.dot_dimension_numbers<[1], [0], [0], [1], [0, 0, 1, 1], [], []>} : vector<2x32xf32>, vector<32x128xf32>, vector<2x128xf32> -> vector<2x128xf32>
    %c0_10 = arith.constant 0 : index
    %c0_11 = arith.constant 0 : index
    %24 = vector.load %arg3[%c0_10, %c0_11] : memref<1x128xf32, #tpu.memory_space<vmem>>, vector<1x128xf32>
    %25 = vector.broadcast %24 : vector<1x128xf32> to vector<2x128xf32>
    %26 = arith.addf %23, %25 : vector<2x128xf32>
    %c0_12 = arith.constant 0 : index
    %c0_13 = arith.constant 0 : index
    %27 = vector.load %arg4[%c0_12, %c0_13] : memref<2x128xf32, #tpu.memory_space<vmem>>, vector<2x128xf32>
    tpu.vector_store %arg4[%c0_12, %c0_13], %26 {strides = array<i32>} : memref<2x128xf32, #tpu.memory_space<vmem>>, vector<2x128xf32>,
    return
  }
  func.func @transform_0(%arg0: i32) -> (i32, i32, i32) {
    %c0_i32 = arith.constant 0 : i32
    %c0_i32_0 = arith.constant 0 : i32
    %c0_i32_1 = arith.constant 0 : i32
    return %arg0, %c0_i32, %c0_i32_0 : i32, i32, i32
  }
  func.func @transform_1(%arg0: i32) -> (i32, i32) {
    %c0_i32 = arith.constant 0 : i32
    %c0_i32_0 = arith.constant 0 : i32
    %c0_i32_1 = arith.constant 0 : i32
    return %c0_i32, %c0_i32_0 : i32, i32
  }
  func.func @transform_2(%arg0: i32) -> (i32, i32) {
    %c0_i32 = arith.constant 0 : i32
    %c0_i32_0 = arith.constant 0 : i32
    %c0_i32_1 = arith.constant 0 : i32
    return %c0_i32, %c0_i32_0 : i32, i32
  }
  func.func @transform_3(%arg0: i32) -> (i32, i32) {
    %c0_i32 = arith.constant 0 : i32
    %c0_i32_0 = arith.constant 0 : i32
    return %arg0, %c0_i32 : i32, i32
  }
}

</mosaic_0001>

<bundles_post_ra>
// kernel: tpu_custom_call.1
= control target key start
LH: loop header
LB: loop body
LE: loop exit
PB: predicated region body
PF: predicated region fallthrough
CT: control target
= control target key end

     0   :  { %vm56_vm0 = vcmask 261120   ;;  %s265_s0 = inlined_call_operand.vmem [shape: f32[2,9,32], index: 0, kind: input, shape index: {}]   ;;  %s266_s1 = inlined_call_operand.vmem [shape: f32[32,128], index: 1, kind: input, shape index: {}]   ;;  %s267_s2 = inlined_call_operand.vmem [shape: f32[1,128], index: 2, kind: input, shape index: {}]   ;;  %s268_s3 = inlined_call_operand.hbm [shape: f32[2,128], index: 3, kind: output, shape index: {}]  }
   0x1   :  { %v41_v0 = vld [vmem:[%s265_s0] sm:$0xff]  ;;  %v43_v1 = vld [vmem:[%s265_s0 + $0x10] sm:$0xff] }
   0x2   :  { %v57_v2 = vsel %vm56_vm0, %v41_v0, -inf  ;;  %v64_v3 = vsel %vm56_vm0, %v43_v1, -inf }
   0x3   :  { %8 = vsyncpa [#allocation4], 0  ;;  %v58_v4 = vrot.slane %v57_v2, 4  ;;  %v65_v5 = vrot.slane %v64_v3, 4  ;;  %vm73_vm1 = vcmask 1041409   ;;  %vm76_vm2 = vcmask 254976  }
   0x4   :  { %v211_v18 = vmov 32.0   ;;  %v125_v35 = vld [vmem:[%s266_s1 + $0x18] sm:$0xff]  ;;  %v124_v36 = vld [vmem:[%s266_s1 + $0x10] sm:$0xff]  ;;  %v123_v37 = vld [vmem:[%s266_s1 + $0x8] sm:$0xff]  ;;  %s212_s24 = smov [#allocation3]   ;;  %s164_s28 = sshll.u32 %s268_s3, 4  ;;  %s165_s28 = int_to_ptr.hbm [resolvable:$true] %s164_s28 }
   0x5   :  { %v59_v6 = vmax.f32 %v57_v2, %v58_v4  ;;  %v66_v7 = vmax.f32 %v64_v3, %v65_v5  ;;  %181 = vrcp.f32 %v211_v18  ;;  %148 = vmatpush.msra.mxu0 %v125_v35  ;;  %v122_v38 = vld [vmem:[%s266_s1] sm:$0xff]  ;;  %s162_s25 = sshll.u32 %s212_s24, 4  ;;  %s163_s25 = int_to_ptr.vmem [resolvable:$true] %s162_s25 }
   0x6   :  { %v180_v54 = vld [vmem:[%s267_s2] ss:$0 sm:$0xff] }
   0x7   :  { %v60_v8 = vrot.slane %v59_v6, 2  ;;  %v67_v9 = vrot.slane %v66_v7, 2  ;;  %149 = vmatpush.msra.mxu0 %v124_v36 }
   0x9   :  { %v61_v10 = vmax.f32 %v59_v6, %v60_v8  ;;  %v68_v11 = vmax.f32 %v66_v7, %v67_v9  ;;  %150 = vmatpush.msra.mxu0 %v123_v37 }
   0xb   :  { %v62_v12 = vrot.slane %v61_v10, 1  ;;  %v69_v13 = vrot.slane %v68_v11, 1  ;;  %v182_v19 = vpop.eup %181  ;;  %151 = vmatpush.msra.mxu0 %v122_v38 }
   0xc   :  { %v81_v20 = vmul.f32 32.0, %v182_v19  ;;  %vm85_vm3 = vweird.f32 %v182_v19 }
   0xd   :  { %v63_v14 = vmax.f32 %v61_v10, %v62_v12  ;;  %v70_v15 = vmax.f32 %v68_v11, %v69_v13 }
   0xe   :  { %v82_v21 = vsub.f32 1.0, %v81_v20 }
   0xf   :  { %v74_v16 = vsel %vm73_vm1, %v70_v15, %v63_v14 }
  0x10   :  { %v77_v17 = vsel %vm76_vm2, %v74_v16, 0.0  ;;  %v83_v22 = vmul.f32 %v182_v19, %v82_v21 }
  0x11   :  { %78 = vadd.xlane.f32.xlu0 %v77_v17 }
  0x12   :  { %v84_v23 = vadd.f32 %v182_v19, %v83_v22 }
  0x14   :  { %v86_v24 = vsel %vm85_vm3, %v182_v19, %v84_v23 }
  0x84   :  { %v79_v25 = vpop.xlane.xlu0 %78 }
  0x85   :  { %v87_v26 = vmul.f32 %v86_v24, %v79_v25 }
  0x87   :  { %v89_v27 = vrot.slane %v87_v26, 1  ;;  %v92_v28 = vsub.f32 %v63_v14, %v87_v26 }
  0x89   :  { %v93_v29 = vsub.f32 %v70_v15, %v89_v27  ;;  %v94_v31 = vmul.f32 %v92_v28, %v92_v28 }
  0x8b   :  { %v95_v30 = vmul.f32 %v93_v29, %v93_v29 }
  0x8d   :  { %v98_v32 = vrot.slane %v95_v30, 7 }
  0x8f   :  { %v99_v33 = vsel %vm73_vm1, %v98_v32, %v94_v31 }
  0x90   :  { %v101_v34 = vsel %vm76_vm2, %v99_v33, 0.0 }
  0x91   :  { %102 = vadd.xlane.f32.xlu0 %v101_v34 }
 0x104   :  { %v103_v39 = vpop.xlane.xlu0 %102 }
 0x105   :  { %v104_v40 = vmul.f32 %v103_v39, %v86_v24 }
 0x107   :  { %v105_v41 = vadd.f32 1e-05, %v104_v40 }
 0x109   :  { %183 = vrsqrt.f32 %v105_v41  ;;  %vm112_vm5 = vweird.f32 %v105_v41 }
 0x10f   :  { %v184_v42 = vpop.eup %183 }
 0x110   :  { %v107_v43 = vmul.f32 %v184_v42, %v105_v41  ;;  %vm113_vm4 = vweird.f32 %v184_v42 }
 0x111   :  { %vm114_vm6 = vmor %vm112_vm5, %vm113_vm4 }
 0x112   :  { %v108_v44 = vmul.f32 %v184_v42, %v107_v43 }
 0x114   :  { %v109_v45 = vmul.f32 0.5, %v108_v44 }
 0x116   :  { %v110_v46 = vsub.f32 1.5, %v109_v45 }
 0x118   :  { %v111_v47 = vmul.f32 %v184_v42, %v110_v46 }
 0x11a   :  { %v115_v48 = vsel %vm114_vm6, %v184_v42, %v111_v47 }
 0x11b   :  { %v117_v49 = vrot.slane %v115_v48, 1  ;;  %v120_v51 = vmul.f32 %v115_v48, %v92_v28 }
 0x11d   :  { %v121_v50 = vmul.f32 %v117_v49, %v93_v29 }
 0x11f   :  { %v132_v52 = vrot.slane %v121_v50, 7 }
 0x121   :  { %v133_v53 = vsel %vm73_vm1, %v132_v52, %v120_v51 }
 0x122   :  { %177 = vmatmul.msk.f32.vlgmr.msra.gmra.mxu0 %vm56_vm0, %v133_v53 }
 0x19f   :  { %v153_v55 = vpop.f32.mrf.mxu0 }
 0x1a0   :  { %v154_v56 = vadd.f32 %v180_v54, %v153_v55 }
 0x1a2   :  { %156 = vst [vmem:[#allocation3] sm:$0x3] %v154_v56 }
 0x1a3   :  { %167 = dma.vmem_to_hbm [thread:$0]  %s163_s25, 32, %s165_s28, [#allocation4]  }
 0x1a4   :  { %209 = dma.done.wait [#allocation4], 32  }
 0x1a5   :  { %210 = vsyncadd [#allocation4], 4294967264 }
 0x1a6   :  { %172 = vsyncpa [#allocation4], 1 }

</bundles_post_ra>
